<compile_context>
chip_gen: v7x
topology: tpu7x:2x2x1
jax: 0.10.0
libtpu: 0.0.40
codegen_flags: <defaults>
</compile_context>

<pallas_src>
import jax
import jax.numpy as jnp
from jax.experimental import pallas as pl
from jax.experimental.pallas import tpu as pltpu


# ----------------------------------------------------------------------------
# Helpers
# ----------------------------------------------------------------------------
def _round_up(x, m):
    return -(-x // m) * m


def _vmem_capacity_bytes(default=64 * 1024 * 1024):
    """Physical VMEM of the local TPU generation (conservative v7x fallback)."""
    try:
        info = pltpu.get_tpu_info()
        cap = getattr(info, "vmem_capacity_bytes", None)
        if cap:
            return int(cap)
    except Exception:
        pass
    return default


# ----------------------------------------------------------------------------
# Kernel
# ----------------------------------------------------------------------------
def _fused_critic_kernel(obs_ref, act_ref,
                         w1o_ref, w1a_ref, b1_ref,
                         w2_ref, b2_ref,
                         w3_ref, b3_ref,
                         out_ref):
    """One batch tile of the fused two-head critic MLP.

    out[:, 0] = Q1(cat(obs, act)),  out[:, 1] = Q2(cat(obs, act)).
    Layer 1 is split so the concat never materializes; heads 1/2 live in the
    low/high halves of the 2H hidden dimension (block-diagonal W2 keeps them
    independent, exactly matching two separate QFunction MLPs).
    All accumulation / activations in f32.
    """
    obs = obs_ref[...].astype(jnp.float32)
    act = act_ref[...].astype(jnp.float32)

    # Layer 1: obs part on the MXU, action part (K = act_dim, tiny) as
    # rank-1 VPU FMAs -- avoids an almost-pure-drain K=4 vmatmul.
    h = jnp.dot(obs, w1o_ref[...], preferred_element_type=jnp.float32)
    for j in range(act_ref.shape[1]):          # static, tiny (act_dim)
        h = h + act[:, j:j + 1] * w1a_ref[j:j + 1, :]
    h = jnp.maximum(h + b1_ref[...], 0.0)

    # Layer 2: block-diagonal (2H, 2H)
    h = jnp.dot(h, w2_ref[...], preferred_element_type=jnp.float32) + b2_ref[...]
    h = jnp.maximum(h, 0.0)

    # Layer 3: fused head projection -> lane-dense (blk, 2)
    out_ref[...] = (jnp.dot(h, w3_ref[...], preferred_element_type=jnp.float32)
                    + b3_ref[...])


# ----------------------------------------------------------------------------
# Wrapper
# ----------------------------------------------------------------------------
def critic_forward(obs, action, fused_params, *, block_b=None):
    """obs: (B, obs_dim), action: (B, act_dim).  Returns (q1, q2), each (B, 1)."""
    B, obs_dim = obs.shape
    act_dim = action.shape[1]
    w1o, w1a, b1, w2, b2, w3, b3 = fused_params
    H2 = w2.shape[0]  # = 2 * hidden_dim

    # ---- generation-aware batch tile sizing --------------------------------
    vmem_cap = _vmem_capacity_bytes()
    in_row_bytes = obs_dim * obs.dtype.itemsize + act_dim * action.dtype.itemsize
    # Per-row VMEM footprint: double-buffered input tiles + double-buffered
    # (blk, 2) f32 output tile + ~3 live (blk, 2H) f32 intermediates.
    per_row_vmem = 2 * in_row_bytes + 2 * 2 * 4 + 3 * H2 * 4
    weight_bytes = sum(int(p.size) * p.dtype.itemsize for p in fused_params)

    budget = vmem_cap // 4                       # plenty of headroom (v7x: 16 MiB)
    blk_cap = max(16, (budget // per_row_vmem) // 16 * 16)
    blk_cap = min(blk_cap, 65536)
    if block_b is not None:
        blk_cap = min(blk_cap, max(16, (block_b // 16) * 16))

    # >= 2 grid blocks whenever possible so ("parallel",) shards the batch
    # across both v7x TensorCores; multiple of 16 for bf16 sublane packing.
    blk = min(blk_cap, _round_up(max(1, -(-B // 2)), 16))
    n_blocks = pl.cdiv(B, blk)

    # vmem limit: actual need (resident weights + pipelined tiles) + margin.
    need = weight_bytes + per_row_vmem * blk + (2 << 20)
    vmem_limit = int(min(max(need, 32 << 20), (vmem_cap * 3) // 4))

    # ---- advisory cost estimate for the XLA scheduler -----------------------
    flops = 2 * B * (obs_dim * H2 + act_dim * H2 + H2 * H2 + H2 * 2)
    bytes_accessed = (int(obs.size) * obs.dtype.itemsize
                      + int(action.size) * action.dtype.itemsize
                      + weight_bytes
                      + B * 2 * 4)

    q12 = pl.pallas_call(
        _fused_critic_kernel,
        out_shape=jax.ShapeDtypeStruct((B, 2), jnp.float32),
        grid=(n_blocks,),
        in_specs=[
            # batch-tiled activations (double-buffered by the pipeline);
            # the last partial block reads garbage rows that are never stored.
            pl.BlockSpec((blk, obs_dim), lambda i: (i, 0)),
            pl.BlockSpec((blk, act_dim), lambda i: (i, 0)),
            # weights / biases: constant index_map -> stay resident in VMEM
            pl.BlockSpec(w1o.shape, lambda i: (0, 0)),
            pl.BlockSpec(w1a.shape, lambda i: (0, 0)),
            pl.BlockSpec(b1.shape, lambda i: (0, 0)),
            pl.BlockSpec(w2.shape, lambda i: (0, 0)),
            pl.BlockSpec(b2.shape, lambda i: (0, 0)),
            pl.BlockSpec(w3.shape, lambda i: (0, 0)),
            pl.BlockSpec(b3.shape, lambda i: (0, 0)),
        ],
        out_specs=pl.BlockSpec((blk, 2), lambda i: (i, 0)),
        compiler_params=pltpu.CompilerParams(
            dimension_semantics=("parallel",),   # shard batch tiles over TCs (v7x)
            vmem_limit_bytes=vmem_limit,
        ),
        cost_estimate=pl.CostEstimate(
            flops=flops, transcendentals=0, bytes_accessed=bytes_accessed),
    )(obs, action, w1o, w1a, b1, w2, b2, w3, b3)

    return q12[:, 0:1], q12[:, 1:2]


# ----------------------------------------------------------------------------
# Deterministic parameter init (mirrors weight_init: orthogonal W, zero bias).
# ----------------------------------------------------------------------------
def _orthogonal(key, out_dim, in_dim, gain=1.0):
    """Orthogonal init matching torch.nn.init.orthogonal_ semantics.
    Returns torch-layout (out_dim, in_dim)."""
    rows, cols = out_dim, in_dim
    a = jax.random.normal(key, (max(rows, cols), min(rows, cols)), dtype=jnp.float32)
    q, r = jnp.linalg.qr(a)
    q = q * jnp.sign(jnp.diagonal(r))
    if rows < cols:
        q = q.T
    return (gain * q).astype(jnp.float32)


def make_qfunction_params(key, obs_dim, action_dim, hidden_dim):
    """Per-head params in kernel layout (in, out) = torch (out, in) transposed."""
    d = obs_dim + action_dim
    k1, k2, k3 = jax.random.split(key, 3)
    w1 = _orthogonal(k1, hidden_dim, d).T              # (d, H)
    b1 = jnp.zeros((1, hidden_dim), jnp.float32)
    w2 = _orthogonal(k2, hidden_dim, hidden_dim).T     # (H, H)
    b2 = jnp.zeros((1, hidden_dim), jnp.float32)
    w3 = _orthogonal(k3, 1, hidden_dim).T              # (H, 1)
    b3 = jnp.zeros((1, 1), jnp.float32)
    return [w1, b1, w2, b2, w3, b3]


def fuse_critic_params(head1, head2, obs_dim, param_dtype=jnp.float32):
    """Pack the two independent Q-head MLPs into one fused parameter set.
    Weights stay f32 by default (they are ~13 KB; the kernel is HBM-bound on
    activations, so f32 weights cost nothing and tighten parity)."""
    w1_a, b1_a, w2_a, b2_a, w3_a, b3_a = head1
    w1_b, b1_b, w2_b, b2_b, w3_b, b3_b = head2
    H = w2_a.shape[0]

    w1 = jnp.concatenate([w1_a, w1_b], axis=1)                      # (d, 2H)
    w1o = w1[:obs_dim].astype(param_dtype)                          # (obs_dim, 2H)
    w1a = w1[obs_dim:].astype(param_dtype)                          # (act_dim, 2H)
    b1 = jnp.concatenate([b1_a, b1_b], axis=1)                      # (1, 2H) f32

    w2 = jnp.zeros((2 * H, 2 * H), jnp.float32)
    w2 = w2.at[:H, :H].set(w2_a).at[H:, H:].set(w2_b).astype(param_dtype)
    b2 = jnp.concatenate([b2_a, b2_b], axis=1)                      # (1, 2H) f32

    w3 = jnp.zeros((2 * H, 2), jnp.float32)
    w3 = w3.at[:H, 0:1].set(w3_a).at[H:, 1:2].set(w3_b).astype(param_dtype)
    b3 = jnp.concatenate([b3_a, b3_b], axis=1)                      # (1, 2)  f32

    return (w1o, w1a, b1, w2, b2, w3, b3)


def make_critic_params(key, obs_dim, action_dim, hidden_dim,
                       param_dtype=jnp.float32):
    kq1, kq2 = jax.random.split(key)
    head1 = make_qfunction_params(kq1, obs_dim, action_dim, hidden_dim)
    head2 = make_qfunction_params(kq2, obs_dim, action_dim, hidden_dim)
    fused = fuse_critic_params(head1, head2, obs_dim, param_dtype)
    return fused, (head1, head2)


def reference_forward(obs, action, head1, head2):
    """Plain-JAX f32 reference of Critic.forward (two independent QFunctions)."""
    x = jnp.concatenate([obs, action], axis=1).astype(jnp.float32)

    def qfn(p):
        w1, b1, w2, b2, w3, b3 = p
        h = jnp.maximum(x @ w1 + b1, 0.0)
        h = jnp.maximum(h @ w2 + b2, 0.0)
        return h @ w3 + b3

    return qfn(head1), qfn(head2)


# TODO(synk): Critic.outputs dict + log() are host-side logging with no kernel
# equivalent; only the forward math is implemented here.

if __name__ == "__main__":
    # Shapes consistent with the module:
    # input_dim (obs feature dim) = 32, action_shape = (4,), hidden_dim = 32.
    B, OBS_DIM, ACT_DIM, HIDDEN = 8, 32, 4, 32

    key = jax.random.PRNGKey(0)
    k_obs, k_act, k_params = jax.random.split(key, 3)

    obs = jax.random.normal(k_obs, (B, OBS_DIM), dtype=jnp.float32)
    action = jax.random.normal(k_act, (B, ACT_DIM), dtype=jnp.float32)
    fused_params, (head1, head2) = make_critic_params(
        k_params, OBS_DIM, ACT_DIM, HIDDEN)

    q1, q2 = critic_forward(obs, action, fused_params)
    q1 = jax.block_until_ready(q1)
    q2 = jax.block_until_ready(q2)

    q1_ref, q2_ref = reference_forward(obs, action, head1, head2)
    assert q1.shape == (B, 1) and q2.shape == (B, 1)
    # Weights / activations are f32 now; tolerance covers MXU pass rounding.
    assert jnp.allclose(q1, q1_ref, atol=2e-2, rtol=2e-2)
    assert jnp.allclose(q2, q2_ref, atol=2e-2, rtol=2e-2)

    print("KERNEL_OK")
</pallas_src>

<mosaic_0001>
module attributes {stable_mosaic.version = 11 : i64} {
  func.func @_fused_critic_kernel(%arg0: i32, %arg1: memref<16x32xf32, #tpu.memory_space<vmem>>, %arg2: memref<16x4xf32, #tpu.memory_space<vmem>>, %arg3: memref<32x64xf32, #tpu.memory_space<vmem>>, %arg4: memref<4x64xf32, #tpu.memory_space<vmem>>, %arg5: memref<1x64xf32, #tpu.memory_space<vmem>>, %arg6: memref<64x64xf32, #tpu.memory_space<vmem>>, %arg7: memref<1x64xf32, #tpu.memory_space<vmem>>, %arg8: memref<64x2xf32, #tpu.memory_space<vmem>>, %arg9: memref<1x2xf32, #tpu.memory_space<vmem>>, %arg10: memref<16x2xf32, #tpu.memory_space<vmem>>) attributes {dimension_semantics = [#tpu.dimension_semantics<parallel>], iteration_bounds = array<i64: 1>, scalar_prefetch = 0 : i64, scratch_operands = 0 : i64, tpu.core_type = #tpu.core_type<tc>, window_params = [{transform_indices = @transform_0, window_bounds = array<i64: 16, 32>}, {transform_indices = @transform_1, window_bounds = array<i64: 16, 4>}, {pipeline_mode = #tpu.pipeline_mode<synchronous>, transform_indices = @transform_2, window_bounds = array<i64: 32, 64>}, {pipeline_mode = #tpu.pipeline_mode<synchronous>, transform_indices = @transform_3, window_bounds = array<i64: 4, 64>}, {pipeline_mode = #tpu.pipeline_mode<synchronous>, transform_indices = @transform_4, window_bounds = array<i64: 1, 64>}, {pipeline_mode = #tpu.pipeline_mode<synchronous>, transform_indices = @transform_5, window_bounds = array<i64: 64, 64>}, {pipeline_mode = #tpu.pipeline_mode<synchronous>, transform_indices = @transform_6, window_bounds = array<i64: 1, 64>}, {pipeline_mode = #tpu.pipeline_mode<synchronous>, transform_indices = @transform_7, window_bounds = array<i64: 64, 2>}, {pipeline_mode = #tpu.pipeline_mode<synchronous>, transform_indices = @transform_8, window_bounds = array<i64: 1, 2>}, {transform_indices = @transform_9, window_bounds = array<i64: 16, 2>}]} {
    %c0 = arith.constant 0 : index
    %c0_0 = arith.constant 0 : index
    %0 = vector.load %arg1[%c0, %c0_0] : memref<16x32xf32, #tpu.memory_space<vmem>>, vector<16x32xf32>
    %c0_1 = arith.constant 0 : index
    %c0_2 = arith.constant 0 : index
    %1 = vector.load %arg2[%c0_1, %c0_2] : memref<16x4xf32, #tpu.memory_space<vmem>>, vector<16x4xf32>
    %c0_3 = arith.constant 0 : index
    %c0_4 = arith.constant 0 : index
    %2 = vector.load %arg3[%c0_3, %c0_4] : memref<32x64xf32, #tpu.memory_space<vmem>>, vector<32x64xf32>
    %cst = arith.constant dense<0.000000e+00> : vector<16x64xf32>
    %3 = tpu.matmul %0, %2, %cst {dimension_numbers = #tpu.dot_dimension_numbers<[1], [0], [0], [1], [0, 0, 1, 1], [], []>} : vector<16x32xf32>, vector<32x64xf32>, vector<16x64xf32> -> vector<16x64xf32>
    %4 = vector.extract_strided_slice %1 {offsets = [0, 0], sizes = [16, 1], strides = [1, 1]} : vector<16x4xf32> to vector<16x1xf32>
    %c0_5 = arith.constant 0 : index
    %c0_6 = arith.constant 0 : index
    %5 = vector.load %arg4[%c0_5, %c0_6] : memref<4x64xf32, #tpu.memory_space<vmem>>, vector<1x64xf32>
    %6 = vector.broadcast %4 : vector<16x1xf32> to vector<16x64xf32>
    %7 = vector.broadcast %5 : vector<1x64xf32> to vector<16x64xf32>
    %8 = arith.mulf %6, %7 : vector<16x64xf32>
    %9 = arith.addf %3, %8 : vector<16x64xf32>
    %10 = vector.extract_strided_slice %1 {offsets = [0, 1], sizes = [16, 1], strides = [1, 1]} : vector<16x4xf32> to vector<16x1xf32>
    %c1 = arith.constant 1 : index
    %c0_7 = arith.constant 0 : index
    %11 = vector.load %arg4[%c1, %c0_7] : memref<4x64xf32, #tpu.memory_space<vmem>>, vector<1x64xf32>
    %12 = vector.broadcast %10 : vector<16x1xf32> to vector<16x64xf32>
    %13 = vector.broadcast %11 : vector<1x64xf32> to vector<16x64xf32>
    %14 = arith.mulf %12, %13 : vector<16x64xf32>
    %15 = arith.addf %9, %14 : vector<16x64xf32>
    %16 = vector.extract_strided_slice %1 {offsets = [0, 2], sizes = [16, 1], strides = [1, 1]} : vector<16x4xf32> to vector<16x1xf32>
    %c2 = arith.constant 2 : index
    %c0_8 = arith.constant 0 : index
    %17 = vector.load %arg4[%c2, %c0_8] : memref<4x64xf32, #tpu.memory_space<vmem>>, vector<1x64xf32>
    %18 = vector.broadcast %16 : vector<16x1xf32> to vector<16x64xf32>
    %19 = vector.broadcast %17 : vector<1x64xf32> to vector<16x64xf32>
    %20 = arith.mulf %18, %19 : vector<16x64xf32>
    %21 = arith.addf %15, %20 : vector<16x64xf32>
    %22 = vector.extract_strided_slice %1 {offsets = [0, 3], sizes = [16, 1], strides = [1, 1]} : vector<16x4xf32> to vector<16x1xf32>
    %c3 = arith.constant 3 : index
    %c0_9 = arith.constant 0 : index
    %23 = vector.load %arg4[%c3, %c0_9] : memref<4x64xf32, #tpu.memory_space<vmem>>, vector<1x64xf32>
    %24 = vector.broadcast %22 : vector<16x1xf32> to vector<16x64xf32>
    %25 = vector.broadcast %23 : vector<1x64xf32> to vector<16x64xf32>
    %26 = arith.mulf %24, %25 : vector<16x64xf32>
    %27 = arith.addf %21, %26 : vector<16x64xf32>
    %c0_10 = arith.constant 0 : index
    %c0_11 = arith.constant 0 : index
    %28 = vector.load %arg5[%c0_10, %c0_11] : memref<1x64xf32, #tpu.memory_space<vmem>>, vector<1x64xf32>
    %29 = vector.broadcast %28 : vector<1x64xf32> to vector<16x64xf32>
    %30 = arith.addf %27, %29 : vector<16x64xf32>
    %cst_12 = arith.constant 0.000000e+00 : f32
    %31 = vector.broadcast %cst_12 : f32 to vector<16x64xf32>
    %32 = arith.maximumf %30, %31 : vector<16x64xf32>
    %c0_13 = arith.constant 0 : index
    %c0_14 = arith.constant 0 : index
    %33 = vector.load %arg6[%c0_13, %c0_14] : memref<64x64xf32, #tpu.memory_space<vmem>>, vector<64x64xf32>
    %cst_15 = arith.constant dense<0.000000e+00> : vector<16x64xf32>
    %34 = tpu.matmul %32, %33, %cst_15 {dimension_numbers = #tpu.dot_dimension_numbers<[1], [0], [0], [1], [0, 0, 1, 1], [], []>} : vector<16x64xf32>, vector<64x64xf32>, vector<16x64xf32> -> vector<16x64xf32>
    %c0_16 = arith.constant 0 : index
    %c0_17 = arith.constant 0 : index
    %35 = vector.load %arg7[%c0_16, %c0_17] : memref<1x64xf32, #tpu.memory_space<vmem>>, vector<1x64xf32>
    %36 = vector.broadcast %35 : vector<1x64xf32> to vector<16x64xf32>
    %37 = arith.addf %34, %36 : vector<16x64xf32>
    %cst_18 = arith.constant 0.000000e+00 : f32
    %38 = vector.broadcast %cst_18 : f32 to vector<16x64xf32>
    %39 = arith.maximumf %37, %38 : vector<16x64xf32>
    %c0_19 = arith.constant 0 : index
    %c0_20 = arith.constant 0 : index
    %40 = vector.load %arg8[%c0_19, %c0_20] : memref<64x2xf32, #tpu.memory_space<vmem>>, vector<64x2xf32>
    %cst_21 = arith.constant dense<0.000000e+00> : vector<16x2xf32>
    %41 = tpu.matmul %39, %40, %cst_21 {dimension_numbers = #tpu.dot_dimension_numbers<[1], [0], [0], [1], [0, 0, 1, 1], [], []>} : vector<16x64xf32>, vector<64x2xf32>, vector<16x2xf32> -> vector<16x2xf32>
    %c0_22 = arith.constant 0 : index
    %c0_23 = arith.constant 0 : index
    %42 = vector.load %arg9[%c0_22, %c0_23] : memref<1x2xf32, #tpu.memory_space<vmem>>, vector<1x2xf32>
    %43 = vector.broadcast %42 : vector<1x2xf32> to vector<16x2xf32>
    %44 = arith.addf %41, %43 : vector<16x2xf32>
    %c0_24 = arith.constant 0 : index
    %c0_25 = arith.constant 0 : index
    %45 = vector.load %arg10[%c0_24, %c0_25] : memref<16x2xf32, #tpu.memory_space<vmem>>, vector<16x2xf32>
    tpu.vector_store %arg10[%c0_24, %c0_25], %44 {strides = array<i32>} : memref<16x2xf32, #tpu.memory_space<vmem>>, vector<16x2xf32>,
    return
  }
  func.func @transform_0(%arg0: i32) -> (i32, i32) {
    %c0_i32 = arith.constant 0 : i32
    %c0_i32_0 = arith.constant 0 : i32
    return %arg0, %c0_i32 : i32, i32
  }
  func.func @transform_1(%arg0: i32) -> (i32, i32) {
    %c0_i32 = arith.constant 0 : i32
    %c0_i32_0 = arith.constant 0 : i32
    return %arg0, %c0_i32 : i32, i32
  }
  func.func @transform_2(%arg0: i32) -> (i32, i32) {
    %c0_i32 = arith.constant 0 : i32
    %c0_i32_0 = arith.constant 0 : i32
    %c0_i32_1 = arith.constant 0 : i32
    return %c0_i32, %c0_i32_0 : i32, i32
  }
  func.func @transform_3(%arg0: i32) -> (i32, i32) {
    %c0_i32 = arith.constant 0 : i32
    %c0_i32_0 = arith.constant 0 : i32
    %c0_i32_1 = arith.constant 0 : i32
    return %c0_i32, %c0_i32_0 : i32, i32
  }
  func.func @transform_4(%arg0: i32) -> (i32, i32) {
    %c0_i32 = arith.constant 0 : i32
    %c0_i32_0 = arith.constant 0 : i32
    %c0_i32_1 = arith.constant 0 : i32
    return %c0_i32, %c0_i32_0 : i32, i32
  }
  func.func @transform_5(%arg0: i32) -> (i32, i32) {
    %c0_i32 = arith.constant 0 : i32
    %c0_i32_0 = arith.constant 0 : i32
    %c0_i32_1 = arith.constant 0 : i32
    return %c0_i32, %c0_i32_0 : i32, i32
  }
  func.func @transform_6(%arg0: i32) -> (i32, i32) {
    %c0_i32 = arith.constant 0 : i32
    %c0_i32_0 = arith.constant 0 : i32
    %c0_i32_1 = arith.constant 0 : i32
    return %c0_i32, %c0_i32_0 : i32, i32
  }
  func.func @transform_7(%arg0: i32) -> (i32, i32) {
    %c0_i32 = arith.constant 0 : i32
    %c0_i32_0 = arith.constant 0 : i32
    %c0_i32_1 = arith.constant 0 : i32
    return %c0_i32, %c0_i32_0 : i32, i32
  }
  func.func @transform_8(%arg0: i32) -> (i32, i32) {
    %c0_i32 = arith.constant 0 : i32
    %c0_i32_0 = arith.constant 0 : i32
    %c0_i32_1 = arith.constant 0 : i32
    return %c0_i32, %c0_i32_0 : i32, i32
  }
  func.func @transform_9(%arg0: i32) -> (i32, i32) {
    %c0_i32 = arith.constant 0 : i32
    %c0_i32_0 = arith.constant 0 : i32
    return %arg0, %c0_i32 : i32, i32
  }
}

</mosaic_0001>

<bundles_post_ra>
// kernel: tpu_custom_call.1
= control target key start
LH: loop header
LB: loop body
LE: loop exit
PB: predicated region body
PF: predicated region fallthrough
CT: control target
= control target key end

     0   :  { %14 = vsyncpa [#allocation3], 0  ;;  %s875_s0 = inlined_call_operand.hbm [shape: f32[8,32], index: 0, kind: input, shape index: {}]   ;;  %s876_s1 = inlined_call_operand.vmem [shape: f32[8,4], index: 1, kind: input, shape index: {}]   ;;  %s877_s2 = inlined_call_operand.vmem [shape: f32[32,64], index: 2, kind: input, shape index: {}]   ;;  %s878_s3 = inlined_call_operand.hbm [shape: f32[4,64], index: 3, kind: input, shape index: {}]   ;;  %s879_s4 = inlined_call_operand.hbm [shape: f32[1,64], index: 4, kind: input, shape index: {}]   ;;  %s880_s5 = inlined_call_operand.vmem [shape: f32[64,64], index: 5, kind: input, shape index: {}]   ;;  %s881_s6 = inlined_call_operand.vmem [shape: f32[1,64], index: 6, kind: input, shape index: {}]   ;;  %s882_s7 = inlined_call_operand.vmem [shape: f32[64,2], index: 7, kind: input, shape index: {}]   ;;  %s883_s8 = inlined_call_operand.vmem [shape: f32[1,2], index: 8, kind: input, shape index: {}]   ;;  %s884_s9 = inlined_call_operand.vmem [shape: f32[8,2], index: 9, kind: output, shape index: {}]  }
   0x1   :  { %15 = vsyncpa [#allocation5], 0 }
   0x2   :  { %20 = vsyncadd [#allocation3], 128  ;;  %s691_s30 = smov [#allocation4]   ;;  %s692_s11 = smov [#allocation2]  }
   0x3   :  { %s38_s10 = sshll.u32 %s691_s30, 4  ;;  %s21_s12 = sshll.u32 %s692_s11, 4  ;;  %s39_s10 = int_to_ptr.vmem [resolvable:$true] %s38_s10  ;;  %s750_s12 = int_to_ptr.vmem [resolvable:$true] %s21_s12 }
   0x4   :  { %s621_s15 = scalar_lea.hbm %s878_s3, 64 }
   0x5   :  { %p622_p0 = scmp.ne.s32.totalorder %s878_s3, %s621_s15  ;;  %p625_p1 = scmp.lt.u32.totalorder %s621_s15, %s878_s3 }
   0x7   :  { %p627_p2 = pnand %p625_p1, %p622_p0 }
   0x9   :  { %630 = shalt.err (!%p627_p2)
}
   0xa   :  { %s631_s20 = scalar_lea.vmem %s39_s10, 64  ;;  %p636_p4 = scmp.lt.s32.totalorder %s39_s10, %s39_s10 }
   0xb   :  { %p632_p3 = scmp.ne.s32.totalorder %s39_s10, %s631_s20  ;;  %p637_p5 = scmp.lt.s32.totalorder %s631_s20, %s631_s20 }
   0xd   :  { %p638_p6 = por %p637_p5, %p636_p4 }
   0xf   :  { %p639_p7 = pnand %p638_p6, %p632_p3 }
  0x11   :  { %642 = shalt.err (!%p639_p7)
}
  0x12   :  { %41 = dma.hbm_to_vmem [thread:$0]  %s878_s3, 64, %s39_s10, [#allocation5]  }
  0x13   :  { %s643_s25 = scalar_lea.hbm %s875_s0, 128 }
  0x14   :  { %p644_p8 = scmp.ne.s32.totalorder %s875_s0, %s643_s25  ;;  %p647_p9 = scmp.lt.u32.totalorder %s643_s25, %s875_s0 }
  0x16   :  { %p649_p10 = pnand %p647_p9, %p644_p8 }
  0x18   :  { %652 = shalt.err (!%p649_p10)
}
  0x19   :  { %s653_s30 = scalar_lea.vmem %s750_s12, 128  ;;  %s657_s3 = scalar_lea.vmem %s750_s12, 256 }
  0x1a   :  { %p654_p11 = scmp.ne.s32.totalorder %s750_s12, %s653_s30  ;;  %p658_p12 = scmp.lt.s32.totalorder %s750_s12, %s750_s12 }
  0x1b   :  { %p659_p13 = scmp.lt.s32.totalorder %s657_s3, %s653_s30 }
  0x1d   :  { %p660_p0 = por %p659_p13, %p658_p12 }
  0x1f   :  { %p661_p1 = pnand %p660_p0, %p654_p11 }
  0x21   :  { %664 = shalt.err (!%p661_p1)
}
  0x22   :  { %s693_s10 = smov 128   ;;  %s694_s11 = smov 8  }
  0x23   :  { %27 = dma.hbm_to_vmem [thread:$0]  %s875_s0, 128, %s750_s12, [#allocation3], %s693_s10, %s693_s10, %s694_s11  }
  0x24   :  { %s695_s15 = smov [#allocation6]   ;;  %s665_s19 = scalar_lea.hbm %s879_s4, 16 }
  0x25   :  { %s48_s16 = sshll.u32 %s695_s15, 4  ;;  %p666_p2 = scmp.ne.s32.totalorder %s879_s4, %s665_s19  ;;  %s49_s16 = int_to_ptr.vmem [resolvable:$true] %s48_s16 }
  0x26   :  { %p669_p3 = scmp.lt.u32.totalorder %s665_s19, %s879_s4 }
  0x28   :  { %p671_p4 = pnand %p669_p3, %p666_p2 }
  0x2a   :  { %674 = shalt.err (!%p671_p4)
}
  0x2b   :  { %s675_s24 = scalar_lea.vmem %s49_s16, 16  ;;  %s679_s0 = scalar_lea.vmem %s49_s16, 32 }
  0x2c   :  { %p676_p5 = scmp.ne.s32.totalorder %s49_s16, %s675_s24  ;;  %p680_p6 = scmp.lt.s32.totalorder %s49_s16, %s49_s16 }
  0x2d   :  { %p681_p7 = scmp.lt.s32.totalorder %s679_s0, %s675_s24 }
  0x2f   :  { %p682_p8 = por %p681_p7, %p680_p6 }
  0x31   :  { %p683_p9 = pnand %p682_p8, %p676_p5 }
  0x33   :  { %686 = shalt.err (!%p683_p9)
}
  0x34   :  { %51 = dma.hbm_to_vmem [thread:$0]  %s879_s4, 16, %s49_s16, [#allocation5]  }
  0x35   :  { %687 = dma.done.wait [#allocation3], 256  }
  0x36   :  { %688 = vsyncadd [#allocation3], 4294967040 }
  0x37   :  { %689 = dma.done.wait [#allocation5], 80  }
  0x38   :  { %690 = vsyncadd [#allocation5], 4294967216  ;;  %v696_v0 = vmov 1   ;;  %v697_v1 = vmov 0   ;;  %vm94_vm0 = vcmask 261120   ;;  %v73_v2 = vld [vmem:[%s877_s2] sm:$0xff] }
  0x39   :  { %616 = vset.pattern.permute.xlu1 %v696_v0  ;;  %615 = vset.pattern.permute.xlu0 %v697_v1  ;;  %v74_v3 = vld [vmem:[%s877_s2 + $0x8] sm:$0xff]  ;;  %v75_v4 = vld [vmem:[%s877_s2 + $0x10] sm:$0xff]  ;;  %v76_v6 = vld [vmem:[%s877_s2 + $0x18] sm:$0xff]  ;;  %v698_v15 = vmov 2   ;;  %v699_v16 = vmov 3   ;;  %vm253_vm1 = vcmask 523264  }
  0x3a   :  { %v566_v5 = vpack.c.bf16 %v74_v3, %v73_v2  ;;  %v69_v7 = vld [vmem:[#allocation2] sm:$0xff]  ;;  %v570_v8 = vpack.c.bf16 %v76_v6, %v75_v4  ;;  %v72_v10 = vld [vmem:[%s876_s1 + $0x8] sm:$0xff]  ;;  %v240_v17 = vld [vmem:[%s880_s5 + $0x10] sm:$0xff]  ;;  %vm433_vm2 = vcmask 15360  }
  0x3b   :  { %525 = vmatprep.mubr.msk.f32.mxu0 %vm94_vm0, %v69_v7  ;;  %v71_v9 = vld [vmem:[%s876_s1] sm:$0xff]  ;;  %v70_v11 = vld [vmem:[#allocation2 + $0x8] sm:$0xff]  ;;  %v241_v18 = vld [vmem:[%s880_s5 + $0x18] sm:$0xff] }
  0x3c   :  { %567 = vmatprep.subr.bf16.mxu0 %v566_v5  ;;  %178 = vperm.xlu1 %616, %v71_v9   ;;  %v238_v12 = vld [vmem:[%s880_s5] sm:$0xff]  ;;  %v239_v13 = vld [vmem:[%s880_s5 + $0x8] sm:$0xff]  ;;  %v578_v19 = vpack.c.bf16 %v241_v18, %v240_v17  ;;  %v244_v23 = vld [vmem:[%s880_s5 + $0x30] sm:$0xff] }
  0x3d   :  { %569 = vmatpush3.bf16.msra.mxu0 %v566_v5  ;;  %80 = vperm.xlu0 %615, %v71_v9   ;;  %v574_v14 = vpack.c.bf16 %v239_v13, %v238_v12  ;;  %v242_v20 = vld [vmem:[%s880_s5 + $0x20] sm:$0xff]  ;;  %v243_v21 = vld [vmem:[%s880_s5 + $0x28] sm:$0xff]  ;;  %v245_v24 = vld [vmem:[%s880_s5 + $0x38] sm:$0xff] }
  0x3e   :  { %571 = vmatprep.subr.bf16.mxu0 %v570_v8  ;;  %v582_v22 = vpack.c.bf16 %v243_v21, %v242_v20  ;;  %v586_v25 = vpack.c.bf16 %v245_v24, %v244_v23  ;;  %v337_v26 = vld [vmem:[%s882_s7] sm:$0xff]  ;;  %v338_v27 = vld [vmem:[%s882_s7 + $0x8] sm:$0xff]  ;;  %v339_v28 = vld [vmem:[%s882_s7 + $0x10] sm:$0xff] }
  0x3f   :  { %575 = vmatprep.subr.bf16.mxu1 %v574_v14  ;;  %v590_v29 = vpack.c.bf16 %v338_v27, %v337_v26  ;;  %v340_v30 = vld [vmem:[%s882_s7 + $0x18] sm:$0xff]  ;;  %v341_v32 = vld [vmem:[%s882_s7 + $0x20] sm:$0xff]  ;;  %v342_v33 = vld [vmem:[%s882_s7 + $0x28] sm:$0xff] }
  0x40   :  { %182 = vperm.xlu1 %616, %v72_v10   ;;  %577 = vmatpush3.bf16.msra.mxu1 %v574_v14  ;;  %v594_v31 = vpack.c.bf16 %v340_v30, %v339_v28  ;;  %v598_v34 = vpack.c.bf16 %v342_v33, %v341_v32  ;;  %v478_v41 = vld [vmem:[#allocation4] ss:$0 sm:$0xff]  ;;  %v481_v42 = vld [vmem:[#allocation4 + $0x1] ss:$0 sm:$0xff]  ;;  %v482_v45 = vld [vmem:[#allocation4 + $0x2] ss:$0 sm:$0xff] }
  0x41   :  { %573 = vmatpush3.bf16.msra.mxu0 %v570_v8  ;;  %85 = vperm.xlu0 %615, %v72_v10   ;;  %v483_v47 = vld [vmem:[#allocation4 + $0x3] ss:$0 sm:$0xff]  ;;  %v484_v63 = vld [vmem:[#allocation6] ss:$0 sm:$0xff]  ;;  %v344_v7 = vld [vmem:[%s882_s7 + $0x38] sm:$0xff] }
  0x42   :  { %579 = vmatprep.subr.bf16.mxu1 %v578_v19  ;;  %591 = vmatprep.subr.bf16.mxu0 %v590_v29  ;;  %v343_v6 = vld [vmem:[%s882_s7 + $0x30] sm:$0xff] }
  0x43   :  { %v602_v8 = vpack.c.bf16 %v344_v7, %v343_v6 }
  0x44   :  { %526 = vmatmul.mubr.msk.f32.vlgmr.msra.gmra.mrb[0].mxu0 %vm94_vm0, %v70_v11  ;;  %618 = vset.pattern.permute.xlu1 %v698_v15 }
  0x45   :  { %617 = vset.pattern.permute.xlu0 %v698_v15  ;;  %199 = vperm.xlu1 %618, %v72_v10  }
  0x46   :  { %195 = vperm.xlu0 %617, %v71_v9   ;;  %581 = vmatpush3.bf16.msra.mxu1 %v578_v19 }
  0x47   :  { %583 = vmatprep.subr.bf16.mxu1 %v582_v22  ;;  %593 = vmatpush3.bf16.msra.mxu0 %v590_v29 }
  0x48   :  { %595 = vmatprep.subr.bf16.mxu0 %v594_v31 }
  0x49   :  { %619 = vset.pattern.permute.xlu1 %v699_v16 }
  0x4a   :  { %620 = vset.pattern.permute.xlu0 %v699_v16  ;;  %212 = vperm.xlu1 %619, %v71_v9   ;;  %v485_v9 = vld [vmem:[%s881_s6] ss:$0 sm:$0xff] }
  0x4b   :  { %216 = vperm.xlu0 %620, %v72_v10   ;;  %585 = vmatpush3.bf16.msra.mxu1 %v582_v22  ;;  %v488_v16 = vld [vmem:[%s883_s8] ss:$0 sm:$0xff] }
  0x4c   :  { %587 = vmatprep.subr.bf16.mxu1 %v586_v25  ;;  %597 = vmatpush3.bf16.msra.mxu0 %v594_v31 }
  0x4d   :  { %599 = vmatprep.subr.bf16.mxu0 %v598_v34 }
  0x4f   :  { %589 = vmatpush3.bf16.msra.mxu1 %v586_v25 }
  0x50   :  { %601 = vmatpush3.bf16.msra.mxu0 %v598_v34 }
  0x51   :  { %603 = vmatprep.subr.bf16.mxu0 %v602_v8 }
  0x54   :  { %605 = vmatpush3.bf16.msra.mxu0 %v602_v8 }
  0xbb   :  { %v179_v36 = vpop.permute.xlu1 %178 }
  0xbc   :  { %v81_v35 = vpop.permute.xlu0 %80  ;;  %v189_v53 = vmul.f32 %v481_v42, %v179_v36 }
  0xbd   :  { %v92_v44 = vmul.f32 %v478_v41, %v81_v35 }
  0xbf   :  { %v183_v38 = vpop.permute.xlu1 %182 }
  0xc0   :  { %v86_v37 = vpop.permute.xlu0 %85  ;;  %v190_v49 = vmul.f32 %v481_v42, %v183_v38 }
  0xc1   :  { %v93_v43 = vmul.f32 %v478_v41, %v86_v37 }
  0xc4   :  { %v200_v40 = vpop.permute.xlu1 %199 }
  0xc5   :  { %v196_v39 = vpop.permute.xlu0 %195  ;;  %v207_v55 = vmul.f32 %v482_v45, %v200_v40 }
  0xc6   :  { %v206_v58 = vmul.f32 %v482_v45, %v196_v39 }
  0xc9   :  { %v213_v52 = vpop.permute.xlu1 %212 }
  0xca   :  { %v217_v48 = vpop.permute.xlu0 %216  ;;  %v223_v60 = vmul.f32 %v483_v47, %v213_v52 }
  0xcb   :  { %v224_v57 = vmul.f32 %v483_v47, %v217_v48 }
 0x117   :  { %v527_v46 = vpop.f32.mrb[0].mxu0 }
 0x118   :  { %v173_v50 = vadd.f32 %v527_v46, %v93_v43  ;;  %v167_v51 = vpop.f32.mrb[1].mxu0 }
 0x119   :  { %v168_v54 = vadd.f32 %v167_v51, %v92_v44 }
 0x11a   :  { %v192_v56 = vadd.f32 %v190_v49, %v173_v50 }
 0x11b   :  { %v191_v59 = vadd.f32 %v189_v53, %v168_v54 }
 0x11c   :  { %v209_v61 = vadd.f32 %v207_v55, %v192_v56 }
 0x11d   :  { %v208_v62 = vadd.f32 %v206_v58, %v191_v59 }
 0x11e   :  { %v226_v0 = vadd.f32 %v224_v57, %v209_v61 }
 0x11f   :  { %v225_v1 = vadd.f32 %v223_v60, %v208_v62 }
 0x120   :  { %v235_v2 = vadd.f32 %v484_v63, %v226_v0 }
 0x121   :  { %v234_v3 = vadd.f32 %v484_v63, %v225_v1 }
 0x122   :  { %v237_v5 = vmax.f32 %v235_v2, 0.0 }
 0x123   :  { %v236_v4 = vmax.f32 %v234_v3, 0.0 }
 0x125   :  { %544 = vmatprep.mubr.msk.f32.mxu1 %vm253_vm1, %v236_v4 }
 0x126   :  { %545 = vmatmul.mubr.msk.f32.vlgmr.msra.gmra.mrb[0].mxu1 %vm253_vm1, %v237_v5 }
 0x1f9   :  { %v546_v10 = vpop.f32.mrb[0].mxu1 }
 0x1fa   :  { %v332_v11 = vadd.f32 %v546_v10, %v485_v9  ;;  %v326_v12 = vpop.f32.mrb[1].mxu1 }
 0x1fb   :  { %v327_v13 = vadd.f32 %v485_v9, %v326_v12 }
 0x1fc   :  { %v336_v15 = vmax.f32 %v332_v11, 0.0 }
 0x1fd   :  { %v335_v14 = vmax.f32 %v327_v13, 0.0 }
 0x1ff   :  { %563 = vmatprep.mubr.msk.f32.mxu0 %vm253_vm1, %v335_v14 }
 0x200   :  { %564 = vmatmul.mubr.msk.f32.vlgmr.msra.gmra.mrb[2].mxu0 %vm253_vm1, %v336_v15 }
 0x2d3   :  { %v565_v17 = vpop.f32.mrb[2].mxu0 }
 0x2d4   :  { %v424_v18 = vpop.f32.mrb[3].mxu0 }
 0x2d5   :  { %v425_v19 = vadd.f32 %v488_v16, %v424_v18 }
 0x2d7   :  { %434 = vst.msk [vmem:[#allocation7] sm:$0xff] %vm433_vm2, %v425_v19 }
 0x2de   :  { %v465_v20 = vld [vmem:[#allocation7] sm:$0xff] }
 0x2df   :  { %466 = vst [vmem:[%s884_s9] sm:$0xff] %v465_v20 }
 0x2e0   :  { %472 = vsyncpa [#allocation3], 1 }
 0x2e1   :  { %473 = vsyncpa [#allocation5], 1 }

</bundles_post_ra>
